<compile_context>
chip_gen: v7x
topology: tpu7x:2x2x1
jax: 0.10.0
libtpu: 0.0.40
codegen_flags: <defaults>
</compile_context>

<pallas_src>
import functools
import math

import jax
import jax.numpy as jnp
from jax import lax
from jax.experimental import pallas as pl
from jax.experimental.pallas import tpu as pltpu


def residual_linear_kernel(x_ref, wt_ref, b_ref, o_ref, *, n_col_tiles):
    """One (TM, TN) output tile of: out = x @ Wt + b + x."""
    x = x_ref[...]                                            # (TM, D) f32
    # bf16 operands for the MXU, f32 accumulation.
    y = lax.dot_general(
        x.astype(jnp.bfloat16), wt_ref[...],                  # (TM, D) x (D, TN)
        dimension_numbers=(((1,), (0,)), ((), ())),
        preferred_element_type=jnp.float32)                   # (TM, TN) f32
    if n_col_tiles == 1:
        x_res = x                                             # full-width residual
    else:
        tn = o_ref.shape[-1]
        col0 = pl.multiple_of(pl.program_id(0) * tn, tn)      # lane-aligned start
        x_res = x_ref[:, pl.ds(col0, tn)]                     # residual column slice
    o_ref[...] = (y + b_ref[...] + x_res).astype(o_ref.dtype)


def _spec(shape, index_map, buffers=None):
    """BlockSpec with an optional buffer-count override (fallback if the
    installed jax does not accept pipeline_mode)."""
    if buffers is None:
        return pl.BlockSpec(shape, index_map)
    try:
        return pl.BlockSpec(shape, index_map, pipeline_mode=pl.Buffered(buffers))
    except Exception:
        return pl.BlockSpec(shape, index_map)


def _vmem_capacity_bytes():
    try:
        return int(pltpu.get_tpu_info().vmem_capacity_bytes)
    except Exception:
        return 64 * 1024 * 1024   # conservative: v7x per-TensorCore VMEM


def residual_forward(x, w, b, *, tm=512, tn=512):
    """x: (B, S, D);  w: (D, D) torch-Linear weight (out, in);  b: (D,)."""
    B, S, D = x.shape
    R = B * S
    x2 = x.reshape(R, D)

    # Weight once transposed to (in, out) K-major layout and cast to bf16
    # (one-time XLA op on the weight, amortized over all row tiles).
    wt = jnp.asarray(w).T.astype(jnp.bfloat16)                # (D, D) = (in, out)
    b2 = jnp.asarray(b).astype(jnp.float32).reshape(1, D)

    # Column tile: a multiple of 128 dividing D when D is 128-aligned, else
    # the full extent (allowed: block dim == array dim).  No padding either way.
    if D % 128 == 0:
        TN = math.gcd(D, max(tn, 128))
    else:
        TN = D
    num_n = D // TN

    # Row tile: full extent for small R, otherwise tm (multiple of 8).
    TM = min(tm, R)

    # Explicit VMEM budget: double-buffered x & out tiles, single-buffered
    # resident W (bf16) and bias.  Shrink TM if it would not fit on this chip.
    def budget(tm_):
        return (2 * tm_ * D * x2.dtype.itemsize       # x tiles
                + 2 * tm_ * TN * x2.dtype.itemsize    # out tiles
                + 1 * D * TN * wt.dtype.itemsize      # weight (single buffer)
                + 1 * TN * b2.dtype.itemsize)         # bias

    vmem_cap = _vmem_capacity_bytes()
    while TM > 64 and budget(TM) * 1.5 > vmem_cap - (4 << 20):
        TM = max(64, TM // 2)
    vmem_limit = int(min(max(budget(TM) * 1.5 + (2 << 20), 32 << 20),
                         vmem_cap - (2 << 20)))

    grid = (num_n, pl.cdiv(R, TM))   # N outer (megacore split), rows inner

    out = pl.pallas_call(
        functools.partial(residual_linear_kernel, n_col_tiles=num_n),
        out_shape=jax.ShapeDtypeStruct((R, D), x.dtype),
        grid_spec=pltpu.PrefetchScalarGridSpec(
            num_scalar_prefetch=0,
            grid=grid,
            in_specs=[
                _spec((TM, D), lambda j, i: (i, 0)),               # x rows
                _spec((D, TN), lambda j, i: (0, j), buffers=1),    # W^T columns
                _spec((1, TN), lambda j, i: (0, j), buffers=1),    # bias
            ],
            out_specs=pl.BlockSpec((TM, TN), lambda j, i: (i, j)),
        ),
        compiler_params=pltpu.CompilerParams(
            dimension_semantics=("parallel", "parallel"),
            vmem_limit_bytes=vmem_limit,
        ),
    )(x2, wt, b2)

    return out.reshape(B, S, D)


if __name__ == "__main__":
    key = jax.random.PRNGKey(0)
    kx, kw, kb = jax.random.split(key, 3)

    batch, seq, hidden = 2, 8, 32
    x = jax.random.normal(kx, (batch, seq, hidden), dtype=jnp.float32)
    # deterministic synthetic "Linear" params (torch layout: weight (out, in))
    w = jax.random.normal(kw, (hidden, hidden), dtype=jnp.float32) * (1.0 / hidden ** 0.5)
    b = jax.random.normal(kb, (hidden,), dtype=jnp.float32) * 0.01

    out = jax.block_until_ready(residual_forward(x, w, b))

    # reference: fn(x) + x  with fn = Linear  (x @ W^T + b)
    ref = jnp.einsum("bsd,ed->bse", x, w) + b + x
    assert out.shape == (batch, seq, hidden)
    # bf16 MXU operands -> looser tolerance than the pure-f32 version
    assert jnp.allclose(out, ref, atol=3e-2, rtol=3e-2), "mismatch vs reference"

    print("KERNEL_OK")
</pallas_src>

<mosaic_0001>
module attributes {stable_mosaic.version = 11 : i64} {
  func.func @residual_linear_kernel(%arg0: i32, %arg1: i32, %arg2: memref<16x32xf32, #tpu.memory_space<vmem>>, %arg3: memref<32x32xbf16, #tpu.memory_space<vmem>>, %arg4: memref<1x32xf32, #tpu.memory_space<vmem>>, %arg5: memref<16x32xf32, #tpu.memory_space<vmem>>) attributes {dimension_semantics = [#tpu.dimension_semantics<parallel>, #tpu.dimension_semantics<parallel>], iteration_bounds = array<i64: 1, 1>, scalar_prefetch = 0 : i64, scratch_operands = 0 : i64, tpu.core_type = #tpu.core_type<tc>, window_params = [{transform_indices = @transform_0, window_bounds = array<i64: 16, 32>}, {pipeline_mode = #tpu.pipeline_mode<synchronous>, transform_indices = @transform_1, window_bounds = array<i64: 32, 32>}, {pipeline_mode = #tpu.pipeline_mode<synchronous>, transform_indices = @transform_2, window_bounds = array<i64: 1, 32>}, {transform_indices = @transform_3, window_bounds = array<i64: 16, 32>}]} {
    %c0 = arith.constant 0 : index
    %c0_0 = arith.constant 0 : index
    %0 = vector.load %arg2[%c0, %c0_0] : memref<16x32xf32, #tpu.memory_space<vmem>>, vector<16x32xf32>
    %1 = arith.truncf %0 : vector<16x32xf32> to vector<16x32xbf16>
    %c0_1 = arith.constant 0 : index
    %c0_2 = arith.constant 0 : index
    %2 = vector.load %arg3[%c0_1, %c0_2] : memref<32x32xbf16, #tpu.memory_space<vmem>>, vector<32x32xbf16>
    %cst = arith.constant dense<0.000000e+00> : vector<16x32xf32>
    %3 = tpu.matmul %1, %2, %cst {dimension_numbers = #tpu.dot_dimension_numbers<[1], [0], [0], [1], [0, 0, 1, 1], [], []>} : vector<16x32xbf16>, vector<32x32xbf16>, vector<16x32xf32> -> vector<16x32xf32>
    %c0_3 = arith.constant 0 : index
    %c0_4 = arith.constant 0 : index
    %4 = vector.load %arg4[%c0_3, %c0_4] : memref<1x32xf32, #tpu.memory_space<vmem>>, vector<1x32xf32>
    %5 = vector.broadcast %4 : vector<1x32xf32> to vector<16x32xf32>
    %6 = arith.addf %3, %5 : vector<16x32xf32>
    %7 = arith.addf %6, %0 : vector<16x32xf32>
    %c0_5 = arith.constant 0 : index
    %c0_6 = arith.constant 0 : index
    %8 = vector.load %arg5[%c0_5, %c0_6] : memref<16x32xf32, #tpu.memory_space<vmem>>, vector<16x32xf32>
    tpu.vector_store %arg5[%c0_5, %c0_6], %7 {strides = array<i32>} : memref<16x32xf32, #tpu.memory_space<vmem>>, vector<16x32xf32>,
    return
  }
  func.func @transform_0(%arg0: i32, %arg1: i32) -> (i32, i32) {
    %c0_i32 = arith.constant 0 : i32
    %c0_i32_0 = arith.constant 0 : i32
    return %arg1, %c0_i32 : i32, i32
  }
  func.func @transform_1(%arg0: i32, %arg1: i32) -> (i32, i32) {
    %c0_i32 = arith.constant 0 : i32
    %c0_i32_0 = arith.constant 0 : i32
    return %c0_i32, %arg0 : i32, i32
  }
  func.func @transform_2(%arg0: i32, %arg1: i32) -> (i32, i32) {
    %c0_i32 = arith.constant 0 : i32
    %c0_i32_0 = arith.constant 0 : i32
    return %c0_i32, %arg0 : i32, i32
  }
  func.func @transform_3(%arg0: i32, %arg1: i32) -> (i32, i32) {
    %c0_i32 = arith.constant 0 : i32
    return %arg1, %arg0 : i32, i32
  }
}

</mosaic_0001>

<bundles_post_ra>
// kernel: tpu_custom_call.1
= control target key start
LH: loop header
LB: loop body
LE: loop exit
PB: predicated region body
PF: predicated region fallthrough
CT: control target
= control target key end

     0   :  { %8 = vsyncpa [#allocation3], 0  ;;  %s309_s0 = inlined_call_operand.hbm [shape: f32[16,32], index: 0, kind: input, shape index: {}]   ;;  %s310_s1 = inlined_call_operand.hbm [shape: bf16[32,32], index: 1, kind: input, shape index: {}]   ;;  %s311_s2 = inlined_call_operand.vmem [shape: f32[1,32], index: 2, kind: input, shape index: {}]   ;;  %s312_s3 = inlined_call_operand.hbm [shape: f32[16,32], index: 3, kind: output, shape index: {}]  }
   0x1   :  { %9 = vsyncpa [#allocation6], 0 }
   0x2   :  { %10 = vsyncpa [#allocation4], 0  ;;  %s235_s12 = smov [#allocation2]   ;;  %s163_s16 = scalar_lea.hbm %s309_s0, 256 }
   0x3   :  { %s16_s13 = sshll.u32 %s235_s12, 4  ;;  %p164_p0 = scmp.ne.s32.totalorder %s309_s0, %s163_s16  ;;  %s17_s13 = int_to_ptr.vmem [resolvable:$true] %s16_s13 }
   0x4   :  { %p167_p1 = scmp.lt.u32.totalorder %s163_s16, %s309_s0 }
   0x6   :  { %p169_p2 = pnand %p167_p1, %p164_p0 }
   0x8   :  { %172 = shalt.err (!%p169_p2)
}
   0x9   :  { %s173_s21 = scalar_lea.vmem %s17_s13, 256  ;;  %p178_p4 = scmp.lt.s32.totalorder %s17_s13, %s17_s13 }
   0xa   :  { %p174_p3 = scmp.ne.s32.totalorder %s17_s13, %s173_s21  ;;  %p179_p5 = scmp.lt.s32.totalorder %s173_s21, %s173_s21 }
   0xc   :  { %p180_p6 = por %p179_p5, %p178_p4 }
   0xe   :  { %p181_p7 = pnand %p180_p6, %p174_p3 }
  0x10   :  { %184 = shalt.err (!%p181_p7)
}
  0x11   :  { %s236_s22 = smov 128   ;;  %s237_s23 = smov 8  }
  0x12   :  { %22 = dma.hbm_to_vmem [thread:$0]  %s309_s0, 256, %s17_s13, [#allocation3], %s236_s22, %s236_s22, %s237_s23  }
  0x13   :  { %s238_s26 = smov [#allocation5]   ;;  %s185_s30 = scalar_lea.hbm %s310_s1, 256 }
  0x14   :  { %s28_s27 = sshll.u32 %s238_s26, 4  ;;  %p186_p8 = scmp.ne.s32.totalorder %s310_s1, %s185_s30  ;;  %s29_s27 = int_to_ptr.vmem [resolvable:$true] %s28_s27 }
  0x15   :  { %p189_p9 = scmp.lt.u32.totalorder %s185_s30, %s310_s1 }
  0x17   :  { %p191_p10 = pnand %p189_p9, %p186_p8 }
  0x19   :  { %194 = shalt.err (!%p191_p10)
}
  0x1a   :  { %s195_s8 = scalar_lea.vmem %s29_s27, 256  ;;  %p200_p12 = scmp.lt.s32.totalorder %s29_s27, %s29_s27 }
  0x1b   :  { %p196_p11 = scmp.ne.s32.totalorder %s29_s27, %s195_s8  ;;  %p201_p13 = scmp.lt.s32.totalorder %s195_s8, %s195_s8 }
  0x1d   :  { %p202_p0 = por %p201_p13, %p200_p12 }
  0x1f   :  { %p203_p1 = pnand %p202_p0, %p196_p11 }
  0x21   :  { %206 = shalt.err (!%p203_p1)
}
  0x22   :  { %s239_s0 = smov 64   ;;  %s240_s9 = smov 4  }
  0x23   :  { %34 = dma.hbm_to_vmem [thread:$0]  %s310_s1, 256, %s29_s27, [#allocation6], %s239_s0, %s239_s0, %s240_s9  }
  0x24   :  { %229 = dma.done.wait [#allocation3], 256  }
  0x25   :  { %230 = vsyncadd [#allocation3], 4294967040 }
  0x26   :  { %231 = dma.done.wait [#allocation6], 256  }
  0x27   :  { %232 = vsyncadd [#allocation6], 4294967040  ;;  %v241_v0 = vmov 0.0   ;;  %vm242_vm0 = vmmov 0   ;;  %v161_v1 = vld [vmem:[#allocation5] sm:$0xff]   ;;  %v162_v2 = vld [vmem:[#allocation5 + $0x8] sm:$0xff]  }
  0x28   :  { %144 = vmatprep.subr.bf16.mxu0 %v241_v0  ;;  %148 = vmatprep.mubr.msk.bf16.mxu0 %vm242_vm0, %v241_v0  ;;  %v44_v3 = vld [vmem:[#allocation2] sm:$0xff]  ;;  %v45_v4 = vld [vmem:[#allocation2 + $0x8] sm:$0xff]  ;;  %vm70_vm1 = vcmask 261120   ;;  %s243_s13 = smov [#allocation7]  }
  0x29   :  { %145 = vmatpush3.bf16.msra.mxu0 %v161_v1  ;;  %v46_v5 = vpack.c.bf16 %v45_v4, %v44_v3  ;;  %v137_v6 = vld [vmem:[%s311_s2] ss:$0 sm:$0xff]  ;;  %s124_s14 = sshll.u32 %s243_s13, 4  ;;  %s125_s14 = int_to_ptr.vmem [resolvable:$true] %s124_s14 }
  0x2a   :  { %146 = vmatprep.subr.bf16.mxu0 %v241_v0  ;;  %s207_s15 = scalar_lea.vmem %s125_s14, 256  ;;  %p212_p3 = scmp.lt.s32.totalorder %s125_s14, %s125_s14 }
  0x2b   :  { %p208_p2 = scmp.ne.s32.totalorder %s125_s14, %s207_s15  ;;  %p213_p4 = scmp.lt.s32.totalorder %s207_s15, %s207_s15 }
  0x2d   :  { %147 = vmatpush3.bf16.msra.mxu0 %v162_v2  ;;  %p214_p5 = por %p213_p4, %p212_p3 }
  0x2f   :  { %p215_p6 = pnand %p214_p5, %p208_p2 }
  0x30   :  { %149 = vmatmul.mubr.msk.bf16.vlgmr.msra.gmra.mrb[0].mxu0 %vm70_vm1, %v46_v5 }
 0x103   :  { %v108_v7 = vpop.f32.mrb[0].mxu0 }
 0x104   :  { %v109_v8 = vadd.f32 %v137_v6, %v108_v7  ;;  %v150_v9 = vpop.f32.mrb[1].mxu0 }
 0x105   :  { %v111_v10 = vpop.f32.mrb[2].mxu0 }
 0x106   :  { %v115_v11 = vadd.f32 %v109_v8, %v44_v3  ;;  %v112_v12 = vadd.f32 %v137_v6, %v111_v10  ;;  %v151_v13 = vpop.f32.mrb[3].mxu0 }
 0x108   :  { %117 = vst.msk [vmem:[#allocation7] sm:$0xff] %vm70_vm1, %v115_v11  ;;  %v116_v14 = vadd.f32 %v112_v12, %v45_v4 }
 0x10a   :  { %118 = vst.msk [vmem:[#allocation7 + $0x8] sm:$0xff] %vm70_vm1, %v116_v14 }
 0x10b   :  { %218 = shalt.err (!%p215_p6)
}
 0x10c   :  { %s219_s17 = scalar_lea.hbm %s312_s3, 256 }
 0x10d   :  { %p220_p7 = scmp.ne.s32.totalorder %s312_s3, %s219_s17  ;;  %p223_p8 = scmp.lt.u32.totalorder %s219_s17, %s312_s3 }
 0x10f   :  { %p225_p9 = pnand %p223_p8, %p220_p7 }
 0x111   :  { %228 = shalt.err (!%p225_p9)
}
 0x112   :  { %130 = dma.vmem_to_hbm [thread:$0]  %s125_s14, 256, %s312_s3, [#allocation4], %s236_s22, %s236_s22, %s237_s23  }
 0x113   :  { %233 = dma.done.wait [#allocation4], 256  }
 0x114   :  { %234 = vsyncadd [#allocation4], 4294967040 }
 0x115   :  { %134 = vsyncpa [#allocation3], 1 }
 0x116   :  { %135 = vsyncpa [#allocation6], 1 }
 0x117   :  { %136 = vsyncpa [#allocation4], 1 }

</bundles_post_ra>
